<compile_context>
chip_gen: v5e
topology: v5e:2x2
jax: 0.10.0
libtpu: 0.0.40
codegen_flags: <defaults>
</compile_context>

<pallas_src>
import functools
import math

import jax
import jax.numpy as jnp
from jax.experimental import pallas as pl
from jax.experimental.pallas import tpu as pltpu

SMOOTH = 1e-08

_LANE = 128
# Per-input block target: 4 MiB => 2 inputs x 2 pipeline buffers ~= 16 MiB live.
_TARGET_BLOCK_BYTES = 4 * 1024 * 1024
_VMEM_LIMIT_BYTES = 32 * 1024 * 1024


def _round_up(x, m):
    return ((x + m - 1) // m) * m


def _dice_kernel(p_ref, t_ref, num_ref, tsum_ref, *, s_total, tile_sub, fold, ragged):
    """One (batch b, spatial-tile h) step.

    p_ref, t_ref : (1, C, tile_sub, 128) input blocks
    num_ref      : (1, fold, 128) per-batch partial of sum(softmax * target)
    tsum_ref     : (1, fold, 128) per-batch partial of sum(target)
    """
    h = pl.program_id(1)

    # Per-batch accumulator init (output block is resident across the h axis).
    @pl.when(h == 0)
    def _():
        num_ref[...] = jnp.zeros_like(num_ref)
        tsum_ref[...] = jnp.zeros_like(tsum_ref)

    p = p_ref[0].astype(jnp.float32)  # (C, tile_sub, 128) dense vregs
    t = t_ref[0].astype(jnp.float32)

    if ragged:
        # Last spatial tile may extend past S: mask BOTH predict (to a finite
        # value) and target (to 0) so garbage VMEM cannot produce inf/NaN.
        rows = jax.lax.broadcasted_iota(jnp.int32, (tile_sub, _LANE), 0) + h * tile_sub
        valid = rows < s_total  # (tile_sub, 128)
        p = jnp.where(valid[None, :, :], p, 0.0)
        t = jnp.where(valid[None, :, :], t, 0.0)

    # Per-pixel softmax over the channel axis (leading, non-vreg axis: the
    # reductions are C-1 elementwise VPU ops over fully dense (8,128) tiles).
    m = jnp.max(p, axis=0)                        # (tile_sub, 128)
    e = jnp.exp(p - m[None])                      # EUP
    se = jnp.sum(e, axis=0)                       # (tile_sub, 128)
    set_ = jnp.sum(e * t, axis=0)                 # (tile_sub, 128)
    tsum = jnp.sum(t, axis=0)                     # (tile_sub, 128)

    # Approx reciprocal on the otherwise-idle EUP slot + one Newton refinement.
    r = pl.reciprocal(se, approx=True)
    r = r * (2.0 - se * r)

    contrib = set_ * r                            # (tile_sub, 128)
    if tile_sub != fold:
        # Layout-preserving fold (sublane groups of 8) down to one vreg.
        contrib = contrib.reshape(tile_sub // fold, fold, _LANE).sum(axis=0)
        tsum = tsum.reshape(tile_sub // fold, fold, _LANE).sum(axis=0)

    num_ref[0] = num_ref[0] + contrib
    tsum_ref[0] = tsum_ref[0] + tsum


def dice_loss(predict, target, smooth=SMOOTH):
    """predict, target: (N, C, *spatial) float32/bfloat16. Returns scalar loss."""
    assert predict.shape == target.shape, "predict & target shape do not match"
    n, c = predict.shape[0], predict.shape[1]
    hw = int(math.prod(predict.shape[2:]))

    p = predict.reshape(n, c, hw)
    t = target.reshape(n, c, hw)

    # Lane alignment: only pads when the flattened spatial size is not a
    # multiple of 128 (uncommon).  Zero padding is exact: padded pixels have
    # target=0 (no num / sum(t) contribution) and the analytic softmax-sum
    # constant below uses the unpadded pixel count.
    hw_pad = _round_up(hw, _LANE)
    if hw_pad != hw:
        p = jnp.pad(p, ((0, 0), (0, 0), (0, hw_pad - hw)))
        t = jnp.pad(t, ((0, 0), (0, 0), (0, hw_pad - hw)))
    s_total = hw_pad // _LANE

    # Free, contiguous view: channel axis leaves the vreg sublane dimension.
    p = p.reshape(n, c, s_total, _LANE)
    t = t.reshape(n, c, s_total, _LANE)

    itemsize = max(p.dtype.itemsize, t.dtype.itemsize)
    if s_total <= 8:
        tile_sub = s_total                      # full (short) sublane dim
    else:
        max_sub = max(8, (_TARGET_BLOCK_BYTES // (c * _LANE * itemsize)) // 8 * 8)
        tile_sub = min(max_sub, (s_total // 8) * 8)
    fold = 8 if tile_sub % 8 == 0 else tile_sub
    n_tiles = pl.cdiv(s_total, tile_sub)
    ragged = (s_total % tile_sub) != 0

    kernel = functools.partial(
        _dice_kernel, s_total=s_total, tile_sub=tile_sub, fold=fold, ragged=ragged
    )

    num_part, tsum_part = pl.pallas_call(
        kernel,
        out_shape=[
            jax.ShapeDtypeStruct((n, fold, _LANE), jnp.float32),
            jax.ShapeDtypeStruct((n, fold, _LANE), jnp.float32),
        ],
        grid_spec=pltpu.PrefetchScalarGridSpec(
            num_scalar_prefetch=0,
            grid=(n, n_tiles),
            in_specs=[
                pl.BlockSpec((1, c, tile_sub, _LANE), lambda b, h: (b, 0, h, 0)),
                pl.BlockSpec((1, c, tile_sub, _LANE), lambda b, h: (b, 0, h, 0)),
            ],
            out_specs=[
                pl.BlockSpec((1, fold, _LANE), lambda b, h: (b, 0, 0)),
                pl.BlockSpec((1, fold, _LANE), lambda b, h: (b, 0, 0)),
            ],
        ),
        # Batch axis is parallel (independent per-batch partial outputs, enables
        # v7x dual-TC for N>=2); the spatial-tile axis accumulates into the
        # resident output block so it stays "arbitrary".
        compiler_params=pltpu.CompilerParams(
            dimension_semantics=("parallel", "arbitrary"),
            vmem_limit_bytes=_VMEM_LIMIT_BYTES,
        ),
    )(p, t)

    # Tiny finalize in JAX (a few KiB): sum the lane-dense partials.
    num = jnp.sum(num_part)
    # sum_c softmax == 1 per pixel, so the softmax part of den is exactly N*HW
    # (unpadded pixel count); only sum(target) is data-dependent.
    den = jnp.float32(n * hw) + jnp.sum(tsum_part)
    return 1.0 - 2.0 * ((num + smooth) / (den + smooth))


def dice_loss_ref(predict, target, smooth=SMOOTH):
    """Pure-JAX reference matching the PyTorch module semantics."""
    s = jax.nn.softmax(predict.astype(jnp.float32), axis=1)
    num = jnp.sum(s * target)
    den = jnp.sum(s + target)
    return 1.0 - 2.0 * ((num + smooth) / (den + smooth))


if __name__ == "__main__":
    key = jax.random.PRNGKey(0)
    k1, k2 = jax.random.split(key)

    N, C, H, W = 2, 4, 16, 16
    predict = jax.random.normal(k1, (N, C, H, W), dtype=jnp.float32)
    # one-hot target with same shape as predict (as the module expects)
    labels = jax.random.randint(k2, (N, H, W), 0, C)
    target = jax.nn.one_hot(labels, C, axis=1, dtype=jnp.float32)

    loss = jax.block_until_ready(dice_loss(predict, target))
    ref = jax.block_until_ready(dice_loss_ref(predict, target))

    assert jnp.allclose(loss, ref, rtol=1e-5, atol=1e-6), (loss, ref)
    print("KERNEL_OK")
</pallas_src>

<mosaic_0001>
module attributes {stable_mosaic.version = 11 : i64} {
  func.func @_dice_kernel(%arg0: i32, %arg1: i32, %arg2: memref<1x4x2x128xf32, #tpu.memory_space<vmem>>, %arg3: memref<1x4x2x128xf32, #tpu.memory_space<vmem>>, %arg4: memref<1x2x128xf32, #tpu.memory_space<vmem>>, %arg5: memref<1x2x128xf32, #tpu.memory_space<vmem>>) attributes {dimension_semantics = [#tpu.dimension_semantics<parallel>, #tpu.dimension_semantics<arbitrary>], iteration_bounds = array<i64: 2, 1>, scalar_prefetch = 0 : i64, scratch_operands = 0 : i64, tpu.core_type = #tpu.core_type<tc>, window_params = [{transform_indices = @transform_0, window_bounds = array<i64: 1, 4, 2, 128>}, {transform_indices = @transform_1, window_bounds = array<i64: 1, 4, 2, 128>}, {transform_indices = @transform_2, window_bounds = array<i64: 1, 2, 128>}, {transform_indices = @transform_3, window_bounds = array<i64: 1, 2, 128>}]} {
    %c0_i32 = arith.constant 0 : i32
    %0 = arith.cmpi eq, %arg1, %c0_i32 : i32
    %1 = arith.extui %0 : i1 to i32
    %c0_i32_0 = arith.constant 0 : i32
    %2 = arith.cmpi ne, %1, %c0_i32_0 : i32
    scf.if %2 {
      %cst_24 = arith.constant 0.000000e+00 : f32
      %34 = vector.broadcast %cst_24 : f32 to vector<1x2x128xf32>
      %c0_25 = arith.constant 0 : index
      %c0_26 = arith.constant 0 : index
      %c0_27 = arith.constant 0 : index
      %35 = vector.load %arg4[%c0_25, %c0_26, %c0_27] : memref<1x2x128xf32, #tpu.memory_space<vmem>>, vector<1x2x128xf32>
      tpu.vector_store %arg4[%c0_25, %c0_26, %c0_27], %34 {strides = array<i32>} : memref<1x2x128xf32, #tpu.memory_space<vmem>>, vector<1x2x128xf32>,
      %cst_28 = arith.constant 0.000000e+00 : f32
      %36 = vector.broadcast %cst_28 : f32 to vector<1x2x128xf32>
      %c0_29 = arith.constant 0 : index
      %c0_30 = arith.constant 0 : index
      %c0_31 = arith.constant 0 : index
      %37 = vector.load %arg5[%c0_29, %c0_30, %c0_31] : memref<1x2x128xf32, #tpu.memory_space<vmem>>, vector<1x2x128xf32>
      tpu.vector_store %arg5[%c0_29, %c0_30, %c0_31], %36 {strides = array<i32>} : memref<1x2x128xf32, #tpu.memory_space<vmem>>, vector<1x2x128xf32>,
    } else {
    }
    %c0 = arith.constant 0 : index
    %c0_1 = arith.constant 0 : index
    %c0_2 = arith.constant 0 : index
    %c0_3 = arith.constant 0 : index
    %3 = vector.load %arg2[%c0, %c0_1, %c0_2, %c0_3] : memref<1x4x2x128xf32, #tpu.memory_space<vmem>>, vector<1x4x2x128xf32>
    %4 = vector.shape_cast %3 : vector<1x4x2x128xf32> to vector<4x2x128xf32>
    %c0_4 = arith.constant 0 : index
    %c0_5 = arith.constant 0 : index
    %c0_6 = arith.constant 0 : index
    %c0_7 = arith.constant 0 : index
    %5 = vector.load %arg3[%c0_4, %c0_5, %c0_6, %c0_7] : memref<1x4x2x128xf32, #tpu.memory_space<vmem>>, vector<1x4x2x128xf32>
    %6 = vector.shape_cast %5 : vector<1x4x2x128xf32> to vector<4x2x128xf32>
    %cst = arith.constant dense<0xFF800000> : vector<2x128xf32>
    %7 = vector.multi_reduction <maximumf>, %4, %cst [0] : vector<4x2x128xf32> to vector<2x128xf32>
    %8 = vector.shape_cast %7 : vector<2x128xf32> to vector<1x2x128xf32>
    %9 = vector.broadcast %8 : vector<1x2x128xf32> to vector<4x2x128xf32>
    %10 = arith.subf %4, %9 : vector<4x2x128xf32>
    %11 = math.exp %10 : vector<4x2x128xf32>
    %cst_8 = arith.constant dense<0.000000e+00> : vector<2x128xf32>
    %12 = vector.multi_reduction <add>, %11, %cst_8 [0] : vector<4x2x128xf32> to vector<2x128xf32>
    %13 = arith.mulf %11, %6 : vector<4x2x128xf32>
    %cst_9 = arith.constant dense<0.000000e+00> : vector<2x128xf32>
    %14 = vector.multi_reduction <add>, %13, %cst_9 [0] : vector<4x2x128xf32> to vector<2x128xf32>
    %cst_10 = arith.constant dense<0.000000e+00> : vector<2x128xf32>
    %15 = vector.multi_reduction <add>, %6, %cst_10 [0] : vector<4x2x128xf32> to vector<2x128xf32>
    %16 = tpu.reciprocal %12 {approx = true} : vector<2x128xf32> -> vector<2x128xf32>
    %17 = arith.mulf %12, %16 : vector<2x128xf32>
    %cst_11 = arith.constant 2.000000e+00 : f32
    %18 = vector.broadcast %cst_11 : f32 to vector<2x128xf32>
    %19 = arith.subf %18, %17 : vector<2x128xf32>
    %20 = arith.mulf %16, %19 : vector<2x128xf32>
    %21 = arith.mulf %14, %20 : vector<2x128xf32>
    %c0_12 = arith.constant 0 : index
    %c0_13 = arith.constant 0 : index
    %c0_14 = arith.constant 0 : index
    %22 = vector.load %arg4[%c0_12, %c0_13, %c0_14] : memref<1x2x128xf32, #tpu.memory_space<vmem>>, vector<1x2x128xf32>
    %23 = vector.shape_cast %22 : vector<1x2x128xf32> to vector<2x128xf32>
    %24 = arith.addf %23, %21 : vector<2x128xf32>
    %c0_15 = arith.constant 0 : index
    %c0_16 = arith.constant 0 : index
    %c0_17 = arith.constant 0 : index
    %25 = vector.load %arg4[%c0_15, %c0_16, %c0_17] : memref<1x2x128xf32, #tpu.memory_space<vmem>>, vector<1x2x128xf32>
    %26 = vector.shape_cast %25 : vector<1x2x128xf32> to vector<2x128xf32>
    %27 = vector.shape_cast %24 : vector<2x128xf32> to vector<1x2x128xf32>
    tpu.vector_store %arg4[%c0_15, %c0_16, %c0_17], %27 {strides = array<i32>} : memref<1x2x128xf32, #tpu.memory_space<vmem>>, vector<1x2x128xf32>,
    %c0_18 = arith.constant 0 : index
    %c0_19 = arith.constant 0 : index
    %c0_20 = arith.constant 0 : index
    %28 = vector.load %arg5[%c0_18, %c0_19, %c0_20] : memref<1x2x128xf32, #tpu.memory_space<vmem>>, vector<1x2x128xf32>
    %29 = vector.shape_cast %28 : vector<1x2x128xf32> to vector<2x128xf32>
    %30 = arith.addf %29, %15 : vector<2x128xf32>
    %c0_21 = arith.constant 0 : index
    %c0_22 = arith.constant 0 : index
    %c0_23 = arith.constant 0 : index
    %31 = vector.load %arg5[%c0_21, %c0_22, %c0_23] : memref<1x2x128xf32, #tpu.memory_space<vmem>>, vector<1x2x128xf32>
    %32 = vector.shape_cast %31 : vector<1x2x128xf32> to vector<2x128xf32>
    %33 = vector.shape_cast %30 : vector<2x128xf32> to vector<1x2x128xf32>
    tpu.vector_store %arg5[%c0_21, %c0_22, %c0_23], %33 {strides = array<i32>} : memref<1x2x128xf32, #tpu.memory_space<vmem>>, vector<1x2x128xf32>,
    return
  }
  func.func @transform_0(%arg0: i32, %arg1: i32) -> (i32, i32, i32, i32) {
    %c0_i32 = arith.constant 0 : i32
    %c0_i32_0 = arith.constant 0 : i32
    %c0_i32_1 = arith.constant 0 : i32
    return %arg0, %c0_i32, %arg1, %c0_i32_0 : i32, i32, i32, i32
  }
  func.func @transform_1(%arg0: i32, %arg1: i32) -> (i32, i32, i32, i32) {
    %c0_i32 = arith.constant 0 : i32
    %c0_i32_0 = arith.constant 0 : i32
    %c0_i32_1 = arith.constant 0 : i32
    return %arg0, %c0_i32, %arg1, %c0_i32_0 : i32, i32, i32, i32
  }
  func.func @transform_2(%arg0: i32, %arg1: i32) -> (i32, i32, i32) {
    %c0_i32 = arith.constant 0 : i32
    %c0_i32_0 = arith.constant 0 : i32
    %c0_i32_1 = arith.constant 0 : i32
    return %arg0, %c0_i32, %c0_i32_0 : i32, i32, i32
  }
  func.func @transform_3(%arg0: i32, %arg1: i32) -> (i32, i32, i32) {
    %c0_i32 = arith.constant 0 : i32
    %c0_i32_0 = arith.constant 0 : i32
    %c0_i32_1 = arith.constant 0 : i32
    return %arg0, %c0_i32, %c0_i32_0 : i32, i32, i32
  }
}

</mosaic_0001>

<bundles_post_ra>
// kernel: tpu_custom_call.1
= control target key start
LH: loop header
LB: loop body
LE: loop exit
PB: predicated region body
PF: predicated region fallthrough
CT: control target
= control target key end

     0   :  { %s1010_s0 = inlined_call_operand.hbm [shape: f32[2,4,2,128], index: 0, kind: input, shape index: {}]   ;;  %s1011_s1 = inlined_call_operand.hbm [shape: f32[2,4,2,128], index: 1, kind: input, shape index: {}]   ;;  %s1012_s2 = inlined_call_operand.hbm [shape: f32[2,2,128], index: 2, kind: output, shape index: {0}]   ;;  %s1013_s3 = inlined_call_operand.hbm [shape: f32[2,2,128], index: 3, kind: output, shape index: {1}]  }
   0x1   :  { %1014 = sst [smem:[#allocation14_spill]] %s1010_s0 }
   0x2   :  { %9 = vsyncpa [#allocation3], 0 }
   0x3   :  { %11 = vsyncpa [#allocation3 + $0x1], 0 }
   0x4   :  { %12 = vsyncpa [#allocation6], 0 }
   0x5   :  { %14 = vsyncpa [#allocation6 + $0x1], 0 }
   0x6   :  { %15 = vsyncpa [#allocation4], 0 }
   0x7   :  { %17 = vsyncpa [#allocation4 + $0x1], 0 }
   0x8   :  { %18 = vsyncpa [#allocation9], 0 }
   0x9   :  { %20 = vsyncpa [#allocation9 + $0x1], 0  ;;  %s816_s12 = smov 0   ;;  %s818_s13 = smov 0  }
   0xa   :  { %s820_s14 = smov 0   ;;  %s822_s15 = smov 0  }
   0xb   :  { %s824_s16 = smov 0   ;;  %s826_s17 = smov 0  }
   0xc LB: > { %s505_s18 = sadd.s32 4294967295, %s791_s17   ;;  %s506_s19 = sadd.s32 4294967294, %s791_s17   ;;  %s791_s17 = sphi %s826_s17, %s26_s17   ;;  %s787_s16 = sphi %s824_s16, %s1025_s16   ;;  %s783_s15 = sphi %s822_s15, %s1024_s15   ;;  %s779_s14 = sphi %s820_s14, %s1023_s14   ;;  %s775_s13 = sphi %s818_s13, %s1022_s13   ;;  %s771_s12 = sphi %s816_s12, %s1021_s12  }
   0xd   : > { %s38_s20 = sadd.s32 1, %s787_s16  ;;  %s47_s21 = sadd.s32 1, %s779_s14 }
   0xe   : > { %p40_p0 = scmp.ge.s32.totalorder %s38_s20, 2  ;;  %p54_p1 = scmp.ne.s32.totalorder %s779_s14, %s775_s13 }
   0xf   : > { %p55_p2 = scmp.eq.s32.totalorder %s791_s17, 0  ;;  %p60_p3 = scmp.ne.s32.totalorder %s775_s13, %s771_s12 }
  0x10   : > { %s1027_s20 = smov (%p40_p0, %s38_s20), 0  ;;  %p61_p5 = scmp.eq.s32.totalorder %s505_s18, 0 }
  0x11   : > { %p857_p4 = por %p55_p2, %p54_p1  ;;  %s42_s23 = ssub.s32 %s787_s16, %s1027_s20 }
  0x12   : > { %p112_p6 = scmp.eq.s32.totalorder %s505_s18, 1  ;;  %p45_p7 = scmp.eq.s32.totalorder %s42_s23, 0 }
  0x13   : > { %p863_p8 = por %p61_p5, %p60_p3  ;;  %p118_p10 = scmp.eq.s32.totalorder %s506_s19, 1 }
  0x14   : > { %p867_p9 = por %p112_p6, %p54_p1  ;;  %p508_p12 = scmp.ge.s32.totalorder %s791_s17, 2 }
  0x15   : > { %s872_s26 = scalar_select %p45_p7, %s779_s14, %s47_s21  }
  0x16   : > { %p874_p11 = por %p118_p10, %p60_p3  ;;  %p550_p13 = scmp.lt.s32.totalorder %s791_s17, 2 }
  0x17   : > { %s881_s28 = sand.u32 1, %s779_s14   ;;  %s526_s30 = sshll.u32 %s787_s16, 3 }
  0x18   : > { %s509_s29 = sshll.u32 %s881_s28, 3  ;;  %s1019_s0 = sld [smem:[#allocation14_spill]] }
  0x19   : > { %s168_s7 = scalar_lea.vmem [#allocation2], %s509_s29  ;;  %p890_p0 = pnand %p550_p13, %p857_p4 }
  0x1a   : > { %s177_s8 = sshll.u32 %s168_s7, 4  ;;  %p515_p1 = scmp.ge.s32.totalorder %s791_s17, 1  ;;  %s178_s8 = int_to_ptr.vmem [resolvable:$true] %s177_s8 }
  0x1b   : > { %s165_s11 = scalar_lea.sflag [#allocation3], %s881_s28  ;;  %s793_s18 = smov 32  }
  0x1c   : > { %s794_s19 = smov 2   ;;  %p208_p2 = scmp.lt.s32.totalorder %s791_s17, 3 }
  0x1d   : > { %s197_s4 = scalar_lea.hbm %s1011_s1, %s526_s30  ;;  %s191_s22 = scalar_lea.vmem [#allocation5], %s509_s29 }
  0x1e   : > { %s174_s6 = scalar_lea.hbm %s1019_s0, %s526_s30  ;;  %p209_p3 = pnand %p515_p1, %p208_p2 }
  0x1f   : > { %s175_s9 = sshll.u32 %s174_s6, 4  ;;  %s198_s5 = sshll.u32 %s197_s4, 4  ;;  %s176_s9 = int_to_ptr.hbm [resolvable:$true] %s175_s9  ;;  %s199_s5 = int_to_ptr.hbm [resolvable:$true] %s198_s5 }
  0x20   : > { %539 = dma.hbm_to_vmem [thread:$0]  (!%p890_p0), %s176_s9, 128, %s178_s8, %s165_s11, %s793_s18, %s793_s18, %s794_s19  }
  0x21   : > { %s200_s6 = sshll.u32 %s191_s22, 4  ;;  %s188_s7 = scalar_lea.sflag [#allocation6], %s881_s28  ;;  %s201_s6 = int_to_ptr.vmem [resolvable:$true] %s200_s6 }
  0x22   : > { %542 = dma.hbm_to_vmem [thread:$0]  (!%p890_p0), %s199_s5, 128, %s201_s6, %s188_s7, %s793_s18, %s793_s18, %s794_s19  }
  0x23   : > { %212 = sbr.rel (%p209_p3) target bundleno = 91 (0x5b), region = 28  ;;  %s906_s0 = sand.u32 (!%p209_p3), 1, %s775_s13  }
  0x24   : > { %s516_s8 = sshll.u32 (!%p209_p3), %s906_s0, 3  ;;  %s215_s9 = scalar_lea.sflag (!%p209_p3), [#allocation3], %s906_s0 }
  0x25   : > { %s218_s11 = scalar_lea.vmem (!%p209_p3), [#allocation2], %s516_s8 }
  0x28   : > { %754 = dma.done.wait (%p863_p8), %s215_s9, 128  }
  0x29   : > { %756 = vsyncadd (%p863_p8), %s215_s9, 4294967168  ;;  %s225_s28 = scalar_lea.sflag [#allocation6], %s906_s0  ;;  %s915_s29 = scalar_lea.vmem [#allocation5], %s516_s8 }
  0x2a   : > { %758 = dma.done.wait (%p863_p8), %s225_s28, 128  }
  0x2b   : > { %760 = vsyncadd (%p863_p8), %s225_s28, 4294967168  ;;  %s518_s30 = sshll.u32 %s906_s0, 1  ;;  %v795_v0 = vmov 0.0   ;;  %vm276_vm0 = vcmask 1041408   ;;  %v268_v1 = vld [vmem:[%s218_s11] sm:$0x3] }
  0x2c   : > { %s922_s10 = scalar_lea.vmem [#allocation7], %s518_s30  ;;  %s925_s18 = scalar_lea.vmem [#allocation8], %s518_s30  ;;  %v269_v2 = vld [vmem:[%s218_s11 + $0x2] sm:$0x3]  ;;  %v270_v3 = vld [vmem:[%s218_s11 + $0x4] sm:$0x3] }
  0x2d   : > { %266 = vst [vmem:[%s922_s10] sm:$0x3] %v795_v0  ;;  %v271_v4 = vld [vmem:[%s218_s11 + $0x6] sm:$0x3]  ;;  %v272_v5 = vld [vmem:[%s915_s29] sm:$0x3]  ;;  %v277_v6 = vsel %vm276_vm0, %v268_v1, -inf }
  0x2e   : > { %267 = vst [vmem:[%s925_s18] sm:$0x3] %v795_v0  ;;  %v278_v7 = vsel %vm276_vm0, %v269_v2, -inf  ;;  %s522_s24 = sshll.u32 %s783_s15, 1  ;;  %v273_v8 = vld [vmem:[%s915_s29 + $0x2] sm:$0x3]  ;;  %v279_v9 = vsel %vm276_vm0, %v270_v3, -inf }
  0x2f   : > { %v280_v10 = vsel %vm276_vm0, %v271_v4, -inf  ;;  %v281_v11 = vmax.f32 %v277_v6, %v278_v7  ;;  %v314_v12 = vsel %vm276_vm0, %v272_v5, 0.0  ;;  %v274_v13 = vld [vmem:[%s915_s29 + $0x4] sm:$0x3]  ;;  %v315_v15 = vsel %vm276_vm0, %v273_v8, 0.0  ;;  %s362_s23 = scalar_lea.hbm %s1013_s3, %s522_s24  ;;  %s364_s4 = sshll.u32 %s925_s18, 4  ;;  %s365_s4 = int_to_ptr.vmem [resolvable:$true] %s364_s4 }
  0x30   : > { %v282_v14 = vmax.f32 %v279_v9, %v280_v10  ;;  %v316_v16 = vadd.f32 %v315_v15, %v314_v12  ;;  %v317_v17 = vsel %vm276_vm0, %v274_v13, 0.0  ;;  %v275_v18 = vld [vmem:[%s915_s29 + $0x6] sm:$0x3]  ;;  %s366_s5 = sshll.u32 %s362_s23, 4  ;;  %s338_s22 = scalar_lea.sflag [#allocation9], %s906_s0  ;;  %s367_s5 = int_to_ptr.hbm [resolvable:$true] %s366_s5 }
  0x31   : > { %v319_v21 = vsel %vm276_vm0, %v275_v18, 0.0  ;;  %s687_s6 = sshra.s32 %s367_s5, 4  ;;  %s693_s11 = scalar_lea.hbm %s1013_s3, 4  ;;  %s688_s6 = int_to_ptr.hbm [resolvable:$true] %s687_s6 }
  0x32   : > { %v283_v19 = vmax.f32 %v281_v11, %v282_v14  ;;  %v318_v20 = vadd.f32 %v317_v17, %v316_v16  ;;  %s689_s7 = scalar_lea.hbm %s688_s6, 2  ;;  %p694_p7 = scmp.lt.s32.totalorder %s688_s6, %s1013_s3 }
  0x33   : > { %p690_p4 = scmp.ne.s32.totalorder %s688_s6, %s689_s7  ;;  %p695_p8 = scmp.lt.s32.totalorder %s693_s11, %s689_s7 }
  0x34   : > { %v284_v22 = vsub.f32 %v268_v1, %v283_v19  ;;  %v285_v23 = vsub.f32 %v269_v2, %v283_v19  ;;  %v286_v24 = vsub.f32 %v270_v3, %v283_v19  ;;  %v287_v25 = vsub.f32 %v271_v4, %v283_v19 }
  0x35   : > { %v320_v26 = vadd.f32 %v319_v21, %v318_v20  ;;  %v329_v27 = vld [vmem:[%s925_s18] sm:$0x3]  ;;  %p691_p5 = pnand %p690_p4, %p867_p9  ;;  %p696_p10 = por %p695_p8, %p694_p7 }
  0x36   : > { %v288_v28 = vmul.f32 1.442695, %v284_v22  ;;  %v290_v29 = vmul.f32 1.442695, %v285_v23  ;;  %v292_v30 = vmul.f32 1.442695, %v286_v24 }
  0x37   : > { %v294_v31 = vmul.f32 1.442695, %v287_v25  ;;  %v330_v32 = vadd.f32 %v329_v27, %v320_v26  ;;  %p692_p6 = pneg %p691_p5 }
  0x38   : > { %603 = vpow2.f32 %v288_v28 }
  0x39   : > { %605 = vpow2.f32 %v290_v29  ;;  %331 = vst [vmem:[%s925_s18] sm:$0x3] %v330_v32  ;;  %p697_p13 = pnand %p696_p10, %p692_p6 }
  0x3a   : > { %607 = vpow2.f32 %v292_v30 }
  0x3b   : > { %700 = shalt.err (!%p697_p13)
}
  0x3c   : > { %533 = dma.vmem_to_hbm [thread:$0]  (%p867_p9), %s365_s4, 32, %s367_s5, %s338_s22   ;;  %609 = vpow2.f32 %v294_v31  ;;  %v326_v59 = vld [vmem:[%s922_s10] sm:$0x3] }
  0x3d   : > { %s348_s19 = scalar_lea.hbm %s1012_s2, %s522_s24  ;;  %s350_s21 = sshll.u32 %s922_s10, 4  ;;  %s351_s21 = int_to_ptr.vmem [resolvable:$true] %s350_s21 }
  0x3e   : > { %v604_v33 = vpop.eup %603  ;;  %s352_s23 = sshll.u32 %s348_s19, 4  ;;  %s333_s4 = scalar_lea.sflag [#allocation4], %s906_s0  ;;  %s353_s23 = int_to_ptr.hbm [resolvable:$true] %s352_s23 }
  0x3f   : > { %v606_v34 = vpop.eup %605  ;;  %v296_v35 = vsel %vm276_vm0, %v604_v33, 0.0  ;;  %v303_v41 = vmul.f32 %v604_v33, %v272_v5  ;;  %s715_s5 = sshra.s32 %s353_s23, 4  ;;  %s721_s24 = scalar_lea.hbm %s1012_s2, 4  ;;  %s716_s5 = int_to_ptr.hbm [resolvable:$true] %s715_s5 }
  0x40   : > { %v608_v36 = vpop.eup %607  ;;  %v297_v37 = vsel %vm276_vm0, %v606_v34, 0.0  ;;  %v304_v42 = vmul.f32 %v606_v34, %v273_v8  ;;  %s717_s22 = scalar_lea.hbm %s716_s5, 2  ;;  %p722_p3 = scmp.lt.s32.totalorder %s716_s5, %s1012_s2 }
  0x41   : > { %v298_v39 = vadd.f32 %v297_v37, %v296_v35  ;;  %v299_v40 = vsel %vm276_vm0, %v608_v36, 0.0  ;;  %v305_v46 = vmul.f32 %v608_v36, %v274_v13  ;;  %v307_v47 = vsel %vm276_vm0, %v303_v41, 0.0  ;;  %p718_p0 = scmp.ne.s32.totalorder %s716_s5, %s717_s22  ;;  %p723_p4 = scmp.lt.s32.totalorder %s721_s24, %s717_s22 }
  0x42   : > { %v610_v38 = vpop.eup %609  ;;  %v308_v48 = vsel %vm276_vm0, %v304_v42, 0.0 }
  0x43   : > { %v301_v43 = vsel %vm276_vm0, %v610_v38, 0.0  ;;  %v300_v44 = vadd.f32 %v299_v40, %v298_v39  ;;  %v309_v49 = vadd.f32 %v308_v48, %v307_v47  ;;  %v306_v50 = vmul.f32 %v610_v38, %v275_v18  ;;  %p719_p1 = pnand %p718_p0, %p867_p9  ;;  %p724_p5 = por %p723_p4, %p722_p3 }
  0x44   : > { %v310_v51 = vsel %vm276_vm0, %v305_v46, 0.0 }
  0x45   : > { %v302_v45 = vadd.f32 %v301_v43, %v300_v44  ;;  %v311_v52 = vadd.f32 %v310_v51, %v309_v49  ;;  %v312_v54 = vsel %vm276_vm0, %v306_v50, 0.0  ;;  %p720_p2 = pneg %p719_p1 }
  0x47   : > { %611 = vrcp.f32 %v302_v45  ;;  %v313_v56 = vadd.f32 %v312_v54, %v311_v52  ;;  %p725_p6 = pnand %p724_p5, %p720_p2 }
  0x4d   : > { %v612_v53 = vpop.eup %611 }
  0x4e   : > { %v322_v55 = vmul.f32 %v612_v53, %v302_v45 }
  0x50   : > { %v323_v57 = vsub.f32 2.0, %v322_v55 }
  0x52   : > { %v324_v58 = vmul.f32 %v612_v53, %v323_v57 }
  0x54   : > { %v325_v60 = vmul.f32 %v324_v58, %v313_v56 }
  0x56   : > { %v327_v61 = vadd.f32 %v326_v59, %v325_v60 }
  0x58   : > { %328 = vst [vmem:[%s922_s10] sm:$0x3] %v327_v61 }
  0x59   : > { %728 = shalt.err (!%p725_p6)
}
  0x5a   : > { %532 = dma.vmem_to_hbm [thread:$0]  (%p867_p9), %s351_s21, 32, %s353_s23, %s333_s4  }
  0x5b PF: > { %s378_s0 = sand.u32 1, %s771_s12   ;;  %p544_p7 = pnand %p508_p12, %p874_p11 }
  0x5c   : > { %s379_s10 = scalar_lea.sflag [#allocation4], %s378_s0 }
  0x5d   : > { %p545_p8 = pneg %p544_p7 }
  0x5f   : > { %762 = dma.done.wait (%p545_p8), %s379_s10, 32  }
  0x60   : > { %764 = vsyncadd (%p545_p8), %s379_s10, 4294967264  ;;  %s389_s9 = scalar_lea.sflag [#allocation9], %s378_s0 }
  0x61   : > { %766 = dma.done.wait (%p545_p8), %s389_s9, 32  }
  0x62   : > { %768 = vsyncadd (%p545_p8), %s389_s9, 4294967264  ;;  %s26_s17 = sadd.s32 1, %s791_s17   ;;  %s1021_s12 = smov %s775_s13 }
  0x63   : > { %p23_p10 = scmp.ge.s32.totalorder %s26_s17, 4   ;;  %s1022_s13 = smov %s779_s14 }
  0x64   : > { %s1023_s14 = smov %s872_s26  ;;  %s1024_s15 = smov %s787_s16 }
  0x65   : > { %s1025_s16 = smov %s1027_s20  ;;  %25 = sbr.rel (!%p23_p10) target bundleno = 12 (0xc), region = 107 }
  0x6a   :  { %395 = vsyncpa [#allocation3], 1 }
  0x6b   :  { %397 = vsyncpa [#allocation3 + $0x1], 1 }
  0x6c   :  { %398 = vsyncpa [#allocation6], 1 }
  0x6d   :  { %400 = vsyncpa [#allocation6 + $0x1], 1 }
  0x6e   :  { %401 = vsyncpa [#allocation4], 1 }
  0x6f   :  { %403 = vsyncpa [#allocation4 + $0x1], 1 }
  0x70   :  { %404 = vsyncpa [#allocation9], 1 }
  0x71   :  { %406 = vsyncpa [#allocation9 + $0x1], 1 }

</bundles_post_ra>
